<compile_context>
chip_gen: v5e
topology: v5e:2x2
jax: 0.10.0
libtpu: 0.0.40
codegen_flags: <defaults>
</compile_context>

<pallas_src>
import jax
import jax.numpy as jnp
from jax.experimental import pallas as pl
from jax.experimental.pallas import tpu as pltpu


def _make_pos_embed_kernel(seq_len):
    """Kernel: copy rows [0, seq_len) of the table straight to the output (HBM->HBM)."""

    def kernel(table_hbm, out_hbm, sem):
        # table_hbm: (max_seq_len, E) ref left in HBM (memory_space=pl.ANY)
        # out_hbm:   (seq_len, E)     ref left in HBM (memory_space=pl.ANY)
        # positions == arange(seq_len)  =>  gather == contiguous slab copy.
        cp = pltpu.make_async_copy(table_hbm.at[pl.ds(0, seq_len)], out_hbm, sem)
        cp.start()
        cp.wait()

    return kernel


def decoder_positional_embedding(table, seq_len, batch_size):
    """Forward of DecoderPositionalEmbedding.

    Args:
      table: (max_seq_len, E) embedding weight (nn.Embedding.weight).
      seq_len: static int, current sequence length.
      batch_size: static int.

    Returns:
      (batch_size, seq_len, E) positional embeddings.
    """
    max_seq_len, emb = table.shape
    assert 0 < seq_len <= max_seq_len

    if seq_len == max_seq_len:
        # The lookup is the whole table; no copy needed at all.
        return jnp.broadcast_to(table[None, :, :], (batch_size, max_seq_len, emb))

    slab = pl.pallas_call(
        _make_pos_embed_kernel(seq_len),
        # Leave both operands in HBM; the kernel's single DMA is the copy.
        in_specs=[pl.BlockSpec(memory_space=pl.ANY)],
        out_specs=pl.BlockSpec(memory_space=pl.ANY),
        out_shape=jax.ShapeDtypeStruct((seq_len, emb), table.dtype),
        scratch_shapes=[pltpu.SemaphoreType.DMA(())],
    )(table)

    # PyTorch's `expand` is a broadcast view; doing it outside the kernel keeps
    # kernel HBM writeback at S*E (not B*S*E) and fuses away under jit.
    return jnp.broadcast_to(slab[None, :, :], (batch_size, seq_len, emb))


if __name__ == "__main__":
    # Deterministic "parameters": nn.Embedding(max_seq_len, E) weight.
    max_seq_len = 16
    emb_size = 32
    seq_len = 8
    batch_size = 2

    key = jax.random.PRNGKey(0)
    table = jax.random.normal(key, (max_seq_len, emb_size), dtype=jnp.float32)

    out = decoder_positional_embedding(table, seq_len, batch_size)
    out = jax.block_until_ready(out)

    # Reference: gather rows [0, seq_len) then broadcast over batch
    # (exactly the PyTorch forward).
    ref = jnp.broadcast_to(table[:seq_len][None, :, :],
                           (batch_size, seq_len, emb_size))

    assert out.shape == (batch_size, seq_len, emb_size)
    assert out.dtype == jnp.float32
    assert jnp.allclose(out, ref), "mismatch vs reference"

    # Also exercise the seq_len == max_seq_len short-circuit path.
    out_full = jax.block_until_ready(
        decoder_positional_embedding(table, max_seq_len, batch_size))
    ref_full = jnp.broadcast_to(table[None, :, :],
                                (batch_size, max_seq_len, emb_size))
    assert jnp.allclose(out_full, ref_full), "mismatch vs reference (full-len path)"

    print("KERNEL_OK")
</pallas_src>

<mosaic_0001>
module attributes {stable_mosaic.version = 11 : i64} {
  func.func @kernel(%arg0: memref<16x32xf32, #tpu.memory_space<any>>, %arg1: memref<8x32xf32, #tpu.memory_space<any>>, %arg2: memref<!tpu.dma_semaphore, #tpu.memory_space<semaphore_mem>>) attributes {dimension_semantics = [], scalar_prefetch = 0 : i64, scratch_operands = 1 : i64, tpu.core_type = #tpu.core_type<tc>} {
    %c0_i32 = arith.constant 0 : i32
    %c0_i32_0 = arith.constant 0 : i32
    %0 = tpu.memref_slice %arg0[%c0_i32, %c0_i32_0] : memref<16x32xf32, #tpu.memory_space<any>> -> memref<8x32xf32, #tpu.memory_space<any>>
    tpu.enqueue_dma source(%0 : memref<8x32xf32, #tpu.memory_space<any>>) target(%arg1 : memref<8x32xf32, #tpu.memory_space<any>>) target_semaphore(%arg2 : memref<!tpu.dma_semaphore, #tpu.memory_space<semaphore_mem>>)
    %c0_i32_1 = arith.constant 0 : i32
    %c0_i32_2 = arith.constant 0 : i32
    %1 = tpu.memref_slice %arg0[%c0_i32_1, %c0_i32_2] : memref<16x32xf32, #tpu.memory_space<any>> -> memref<8x32xf32, #tpu.memory_space<any>>
    tpu.wait_dma2 semaphore(%arg2 : memref<!tpu.dma_semaphore, #tpu.memory_space<semaphore_mem>>) src(%1 : memref<8x32xf32, #tpu.memory_space<any>>) dst(%arg1 : memref<8x32xf32, #tpu.memory_space<any>>)
    return
  }
}

</mosaic_0001>

<bundles_post_ra>
// kernel: tpu_custom_call.1
= control target key start
LH: loop header
LB: loop body
LE: loop exit
PB: predicated region body
PF: predicated region fallthrough
CT: control target
= control target key end

     0   :  { %s32_s12 = smov [#allocation2]   ;;  %s33_s13 = smov [#allocation3]   ;;  %s51_s0 = inlined_call_operand.hbm [shape: f32[16,32], index: 0, kind: input, shape index: {}]   ;;  %s52_s1 = inlined_call_operand.hbm [shape: f32[8,32], index: 1, kind: output, shape index: {}]  }
   0x1   :  { %s10_s8 = sshll.u32 %s51_s0, 4  ;;  %s12_s11 = sshll.u32 %s52_s1, 4  ;;  %s11_s8 = int_to_ptr.hbm [resolvable:$true] %s10_s8  ;;  %s13_s11 = int_to_ptr.hbm [resolvable:$true] %s12_s11 }
   0x2   :  { %s34_s14 = smov 0  }
   0x3   :  { %16 = dma.general %s11_s8, 128, %s13_s11, %s32_s12, %s33_s13, [#allocation4], %s34_s14, 0  }
   0x4   :  { %30 = dma.done.wait [#allocation2], 128 }
   0x5   :  { %31 = vsyncadd [#allocation2], 4294967168 }
   0x6   :  { %20 = vsyncmov [#allocation2] }
   0x9   :  { %s21_s15 = vpop.sfrf %20 }
   0xa   :  { %p26_p0 = scmp.ne.s32.totalorder %s21_s15, 0 }
   0xc   :  { %25 = shalt.err (%p26_p0)  }

</bundles_post_ra>
